<compile_context>
chip_gen: v7x
topology: tpu7x:2x2x1
jax: 0.10.0
libtpu: 0.0.40
codegen_flags: <defaults>
</compile_context>

<pallas_src>
import jax
import jax.numpy as jnp
from jax.experimental import pallas as pl
from jax.experimental.pallas import tpu as pltpu

D_IN = 10
D_HID = 20
D_OUT = 2
LANE = 128  # hidden dim is padded to one full lane width on-chip (weights only)


def mlp_kernel(x_ref, w1_ref, b1_ref, w2_ref, b2_ref, o_ref):
    # x_ref: (TB, 10); w1_ref: (10, 128); b1_ref: (1, 128)
    h = jnp.dot(x_ref[...], w1_ref[...], preferred_element_type=jnp.float32)
    h = jnp.maximum(h + b1_ref[...], 0.0)          # padded hidden cols stay exactly 0
    # w2_ref: (128, 2); b2_ref: (1, 2)
    out = jnp.dot(h, w2_ref[...], preferred_element_type=jnp.float32)
    o_ref[...] = (out + b2_ref[...]).astype(o_ref.dtype)


def _pad2(a, rows, cols):
    return jnp.pad(a, ((0, rows - a.shape[0]), (0, cols - a.shape[1])))


def my_ce_model_forward(x, w1, b1, w2, b2, *, block_b=4096):
    """x: (B, 10); w1: (20, 10); b1: (20,); w2: (2, 20); b2: (2,)  (PyTorch Linear layout)."""
    B, d_in = x.shape
    assert d_in == D_IN
    n_out = w2.shape[0]  # 2

    # Batch tile: multiple of 8 (sublane), capped so the grid has >= 2 steps once
    # B > 8 (v7x megacore + double-buffering), and capped at block_b overall.
    tb_half = ((-(-B // 2)) + 7) // 8 * 8          # ceil(B/2) rounded up to mult of 8
    TB = max(8, min(block_b, tb_half))
    grid = (pl.cdiv(B, TB),)                       # ragged grid: no batch padding

    # Weights/biases: pad only the hidden dim to 128 (lane-dense, inert zeros).
    w1_p = _pad2(w1.T.astype(jnp.float32), D_IN, LANE)            # (10, 128)
    b1_p = _pad2(b1.reshape(1, -1).astype(jnp.float32), 1, LANE)  # (1, 128)
    w2_p = _pad2(w2.T.astype(jnp.float32), LANE, n_out)           # (128, 2)
    b2_p = b2.reshape(1, -1).astype(jnp.float32)                  # (1, 2)

    x_f32 = x.astype(jnp.float32)

    cost = pl.CostEstimate(
        flops=2 * B * (D_IN * D_HID + D_HID * D_OUT),
        transcendentals=0,
        bytes_accessed=4 * (B * D_IN + B * n_out
                            + w1_p.size + b1_p.size + w2_p.size + b2_p.size),
    )

    out = pl.pallas_call(
        mlp_kernel,
        out_shape=jax.ShapeDtypeStruct((B, n_out), x.dtype),
        grid=grid,
        in_specs=[
            pl.BlockSpec((TB, D_IN), lambda i: (i, 0)),     # x: tiled over batch, real 10 cols
            pl.BlockSpec((D_IN, LANE), lambda i: (0, 0)),   # W1: VMEM-resident across steps
            pl.BlockSpec((1, LANE), lambda i: (0, 0)),      # b1: resident
            pl.BlockSpec((LANE, n_out), lambda i: (0, 0)),  # W2: resident
            pl.BlockSpec((1, n_out), lambda i: (0, 0)),     # b2: resident
        ],
        out_specs=pl.BlockSpec((TB, n_out), lambda i: (i, 0)),     # real 2-col output
        compiler_params=pltpu.CompilerParams(
            dimension_semantics=("parallel",),              # shard batch axis across TCs (v7x)
            vmem_limit_bytes=32 * 1024 * 1024,              # safe on v5e/v6e/v7x scoped VMEM
        ),
        cost_estimate=cost,
    )(x_f32, w1_p, b1_p, w2_p, b2_p)

    return out


def reference_forward(x, w1, b1, w2, b2):
    h = jnp.maximum(x @ w1.T + b1, 0.0)
    return h @ w2.T + b2


if __name__ == "__main__":
    key = jax.random.PRNGKey(0)
    k_x, k_w1, k_b1, k_w2, k_b2, k_x2 = jax.random.split(key, 6)

    # Parameters (nn.Linear layout: weight (out, in), bias (out,)).
    w1 = jax.random.uniform(k_w1, (20, 10), minval=-0.3, maxval=0.3, dtype=jnp.float32)
    b1 = jax.random.uniform(k_b1, (20,), minval=-0.3, maxval=0.3, dtype=jnp.float32)
    w2 = jax.random.uniform(k_w2, (2, 20), minval=-0.22, maxval=0.22, dtype=jnp.float32)
    b2 = jax.random.uniform(k_b2, (2,), minval=-0.22, maxval=0.22, dtype=jnp.float32)

    # Primary small-shape check (single grid step).
    B = 8
    x = jax.random.normal(k_x, (B, 10), dtype=jnp.float32)
    out = my_ce_model_forward(x, w1, b1, w2, b2)
    jax.block_until_ready(out)
    ref = reference_forward(x, w1, b1, w2, b2)
    assert out.shape == (B, 2)
    assert jnp.allclose(out, ref, atol=1e-5, rtol=1e-5), "mismatch vs reference (B=8)"

    # Secondary check: batch not a multiple of the tile (exercises the ragged
    # grid / partial final block path: TB=24, grid=2, last block half-valid).
    B2 = 37
    x2 = jax.random.normal(k_x2, (B2, 10), dtype=jnp.float32)
    out2 = my_ce_model_forward(x2, w1, b1, w2, b2)
    jax.block_until_ready(out2)
    ref2 = reference_forward(x2, w1, b1, w2, b2)
    assert out2.shape == (B2, 2)
    assert jnp.allclose(out2, ref2, atol=1e-5, rtol=1e-5), "mismatch vs reference (B=37)"

    print("KERNEL_OK")
</pallas_src>

<mosaic_0001>
module attributes {stable_mosaic.version = 11 : i64} {
  func.func @mlp_kernel(%arg0: i32, %arg1: memref<8x10xf32, #tpu.memory_space<vmem>>, %arg2: memref<10x128xf32, #tpu.memory_space<vmem>>, %arg3: memref<1x128xf32, #tpu.memory_space<vmem>>, %arg4: memref<128x2xf32, #tpu.memory_space<vmem>>, %arg5: memref<1x2xf32, #tpu.memory_space<vmem>>, %arg6: memref<8x2xf32, #tpu.memory_space<vmem>>) attributes {dimension_semantics = [#tpu.dimension_semantics<parallel>], iteration_bounds = array<i64: 1>, scalar_prefetch = 0 : i64, scratch_operands = 0 : i64, tpu.core_type = #tpu.core_type<tc>, window_params = [{transform_indices = @transform_0, window_bounds = array<i64: 8, 10>}, {pipeline_mode = #tpu.pipeline_mode<synchronous>, transform_indices = @transform_1, window_bounds = array<i64: 10, 128>}, {pipeline_mode = #tpu.pipeline_mode<synchronous>, transform_indices = @transform_2, window_bounds = array<i64: 1, 128>}, {pipeline_mode = #tpu.pipeline_mode<synchronous>, transform_indices = @transform_3, window_bounds = array<i64: 128, 2>}, {pipeline_mode = #tpu.pipeline_mode<synchronous>, transform_indices = @transform_4, window_bounds = array<i64: 1, 2>}, {transform_indices = @transform_5, window_bounds = array<i64: 8, 2>}]} {
    %c0 = arith.constant 0 : index
    %c0_0 = arith.constant 0 : index
    %0 = vector.load %arg1[%c0, %c0_0] : memref<8x10xf32, #tpu.memory_space<vmem>>, vector<8x10xf32>
    %c0_1 = arith.constant 0 : index
    %c0_2 = arith.constant 0 : index
    %1 = vector.load %arg2[%c0_1, %c0_2] : memref<10x128xf32, #tpu.memory_space<vmem>>, vector<10x128xf32>
    %cst = arith.constant dense<0.000000e+00> : vector<8x128xf32>
    %2 = tpu.matmul %0, %1, %cst {dimension_numbers = #tpu.dot_dimension_numbers<[1], [0], [0], [1], [0, 0, 1, 1], [], []>} : vector<8x10xf32>, vector<10x128xf32>, vector<8x128xf32> -> vector<8x128xf32>
    %c0_3 = arith.constant 0 : index
    %c0_4 = arith.constant 0 : index
    %3 = vector.load %arg3[%c0_3, %c0_4] : memref<1x128xf32, #tpu.memory_space<vmem>>, vector<1x128xf32>
    %4 = vector.broadcast %3 : vector<1x128xf32> to vector<8x128xf32>
    %5 = arith.addf %2, %4 : vector<8x128xf32>
    %cst_5 = arith.constant 0.000000e+00 : f32
    %6 = vector.broadcast %cst_5 : f32 to vector<8x128xf32>
    %7 = arith.maximumf %5, %6 : vector<8x128xf32>
    %c0_6 = arith.constant 0 : index
    %c0_7 = arith.constant 0 : index
    %8 = vector.load %arg4[%c0_6, %c0_7] : memref<128x2xf32, #tpu.memory_space<vmem>>, vector<128x2xf32>
    %cst_8 = arith.constant dense<0.000000e+00> : vector<8x2xf32>
    %9 = tpu.matmul %7, %8, %cst_8 {dimension_numbers = #tpu.dot_dimension_numbers<[1], [0], [0], [1], [0, 0, 1, 1], [], []>} : vector<8x128xf32>, vector<128x2xf32>, vector<8x2xf32> -> vector<8x2xf32>
    %c0_9 = arith.constant 0 : index
    %c0_10 = arith.constant 0 : index
    %10 = vector.load %arg5[%c0_9, %c0_10] : memref<1x2xf32, #tpu.memory_space<vmem>>, vector<1x2xf32>
    %11 = vector.broadcast %10 : vector<1x2xf32> to vector<8x2xf32>
    %12 = arith.addf %9, %11 : vector<8x2xf32>
    %c0_11 = arith.constant 0 : index
    %c0_12 = arith.constant 0 : index
    %13 = vector.load %arg6[%c0_11, %c0_12] : memref<8x2xf32, #tpu.memory_space<vmem>>, vector<8x2xf32>
    tpu.vector_store %arg6[%c0_11, %c0_12], %12 {strides = array<i32>} : memref<8x2xf32, #tpu.memory_space<vmem>>, vector<8x2xf32>,
    return
  }
  func.func @transform_0(%arg0: i32) -> (i32, i32) {
    %c0_i32 = arith.constant 0 : i32
    %c0_i32_0 = arith.constant 0 : i32
    return %arg0, %c0_i32 : i32, i32
  }
  func.func @transform_1(%arg0: i32) -> (i32, i32) {
    %c0_i32 = arith.constant 0 : i32
    %c0_i32_0 = arith.constant 0 : i32
    %c0_i32_1 = arith.constant 0 : i32
    return %c0_i32, %c0_i32_0 : i32, i32
  }
  func.func @transform_2(%arg0: i32) -> (i32, i32) {
    %c0_i32 = arith.constant 0 : i32
    %c0_i32_0 = arith.constant 0 : i32
    %c0_i32_1 = arith.constant 0 : i32
    return %c0_i32, %c0_i32_0 : i32, i32
  }
  func.func @transform_3(%arg0: i32) -> (i32, i32) {
    %c0_i32 = arith.constant 0 : i32
    %c0_i32_0 = arith.constant 0 : i32
    %c0_i32_1 = arith.constant 0 : i32
    return %c0_i32, %c0_i32_0 : i32, i32
  }
  func.func @transform_4(%arg0: i32) -> (i32, i32) {
    %c0_i32 = arith.constant 0 : i32
    %c0_i32_0 = arith.constant 0 : i32
    %c0_i32_1 = arith.constant 0 : i32
    return %c0_i32, %c0_i32_0 : i32, i32
  }
  func.func @transform_5(%arg0: i32) -> (i32, i32) {
    %c0_i32 = arith.constant 0 : i32
    %c0_i32_0 = arith.constant 0 : i32
    return %arg0, %c0_i32 : i32, i32
  }
}

</mosaic_0001>

<bundles_post_ra>
// kernel: tpu_custom_call.1
= control target key start
LH: loop header
LB: loop body
LE: loop exit
PB: predicated region body
PF: predicated region fallthrough
CT: control target
= control target key end

     0   :  { %vm34_vm0 = vcmask 1041408   ;;  %v306_v0 = vmov 0.0|0.0   ;;  %vm307_vm1 = vmmov 1   ;;  %vm308_vm3 = vmmov 0   ;;  %s406_s1 = inlined_call_operand.vmem [shape: f32[10,128], index: 1, kind: input, shape index: {}]   ;;  %s407_s3 = inlined_call_operand.vmem [shape: f32[128,2], index: 3, kind: input, shape index: {}]   ;;  %s408_s0 = inlined_call_operand.vmem [shape: f32[8,10], index: 0, kind: input, shape index: {}]   ;;  %s409_s2 = inlined_call_operand.vmem [shape: f32[1,128], index: 2, kind: input, shape index: {}]   ;;  %s410_s4 = inlined_call_operand.vmem [shape: f32[1,2], index: 4, kind: input, shape index: {}]   ;;  %s411_s5 = inlined_call_operand.vmem [shape: f32[8,2], index: 5, kind: output, shape index: {}]  }
   0x1   :  { %274 = vmatprep.subr.bf16.mxu0 %v306_v0  ;;  %v21_v1 = vld [vmem:[%s406_s1] sm:$0xff]  ;;  %v22_v2 = vld [vmem:[%s406_s1 + $0x8] sm:$0x3]  ;;  %vm276_vm2 = vmpackc.low %vm34_vm0, %vm307_vm1  ;;  %278 = vmatprep.subr.bf16.mxu1 %v306_v0  ;;  %v309_v4 = vmov 0.0   ;;  %vm30_vm4 = vcmask 80896   ;;  %vm202_vm5 = vcmask 15360  }
   0x2   :  { %v275_v3 = vpack.c.bf16 %v22_v2, %v21_v1  ;;  %236 = vmatprep.mubr.msk.f32.mxu0 %vm308_vm3, %v309_v4  ;;  %v109_v5 = vld [vmem:[%s407_s3] sm:$0xff]  ;;  %v110_v6 = vld [vmem:[%s407_s3 + $0x8] sm:$0xff]  ;;  %271 = vmatprep.mubr.msk.f32.mxu1 %vm308_vm3, %v309_v4  ;;  %v111_v8 = vld [vmem:[%s407_s3 + $0x10] sm:$0xff] }
   0x3   :  { %v279_v7 = vpack.c.bf16 %v110_v6, %v109_v5  ;;  %v112_v9 = vld [vmem:[%s407_s3 + $0x18] sm:$0xff]  ;;  %v20_v10 = vld [vmem:[%s408_s0] sm:$0xff]  ;;  %v114_v13 = vld [vmem:[%s407_s3 + $0x28] sm:$0xff] }
   0x4   :  { %277 = vmatpush3.bf16.msk.msra.mxu0 %vm276_vm2, %v275_v3  ;;  %v282_v11 = vpack.c.bf16 %v112_v9, %v111_v8  ;;  %v113_v12 = vld [vmem:[%s407_s3 + $0x20] sm:$0xff]  ;;  %v115_v15 = vld [vmem:[%s407_s3 + $0x30] sm:$0xff]  ;;  %v116_v16 = vld [vmem:[%s407_s3 + $0x38] sm:$0xff] }
   0x5   :  { %280 = vmatpush3.bf16.msra.mxu1 %v279_v7  ;;  %v285_v14 = vpack.c.bf16 %v114_v13, %v113_v12  ;;  %v288_v17 = vpack.c.bf16 %v116_v16, %v115_v15  ;;  %v117_v18 = vld [vmem:[%s407_s3 + $0x40] sm:$0xff]  ;;  %v118_v19 = vld [vmem:[%s407_s3 + $0x48] sm:$0xff]  ;;  %v119_v21 = vld [vmem:[%s407_s3 + $0x50] sm:$0xff] }
   0x6   :  { %281 = vmatprep.subr.bf16.mxu1 %v306_v0  ;;  %v291_v20 = vpack.c.bf16 %v118_v19, %v117_v18  ;;  %v120_v22 = vld [vmem:[%s407_s3 + $0x58] sm:$0xff]  ;;  %v121_v24 = vld [vmem:[%s407_s3 + $0x60] sm:$0xff]  ;;  %v122_v25 = vld [vmem:[%s407_s3 + $0x68] sm:$0xff] }
   0x7   :  { %237 = vmatmul.mubr.msk.f32.vlgmr.msra.gmra.mrb[0].mxu0 %vm30_vm4, %v20_v10  ;;  %v294_v23 = vpack.c.bf16 %v120_v22, %v119_v21  ;;  %v297_v26 = vpack.c.bf16 %v122_v25, %v121_v24  ;;  %v123_v27 = vld [vmem:[%s407_s3 + $0x70] sm:$0xff]  ;;  %v124_v28 = vld [vmem:[%s407_s3 + $0x78] sm:$0xff]  ;;  %v208_v30 = vld [vmem:[%s409_s2] ss:$0 sm:$0xff] }
   0x8   :  { %v300_v29 = vpack.c.bf16 %v124_v28, %v123_v27  ;;  %v211_v35 = vld [vmem:[%s410_s4] ss:$0 sm:$0xff] }
   0x9   :  { %283 = vmatpush3.bf16.msra.mxu1 %v282_v11 }
   0xa   :  { %284 = vmatprep.subr.bf16.mxu1 %v306_v0 }
   0xd   :  { %286 = vmatpush3.bf16.msra.mxu1 %v285_v14 }
   0xe   :  { %287 = vmatprep.subr.bf16.mxu1 %v306_v0 }
  0x11   :  { %289 = vmatpush3.bf16.msra.mxu1 %v288_v17 }
  0x12   :  { %290 = vmatprep.subr.bf16.mxu1 %v306_v0 }
  0x15   :  { %292 = vmatpush3.bf16.msra.mxu1 %v291_v20 }
  0x16   :  { %293 = vmatprep.subr.bf16.mxu1 %v306_v0 }
  0x19   :  { %295 = vmatpush3.bf16.msra.mxu1 %v294_v23 }
  0x1a   :  { %296 = vmatprep.subr.bf16.mxu1 %v306_v0 }
  0x1d   :  { %298 = vmatpush3.bf16.msra.mxu1 %v297_v26 }
  0x1e   :  { %299 = vmatprep.subr.bf16.mxu1 %v306_v0 }
  0x21   :  { %301 = vmatpush3.bf16.msra.mxu1 %v300_v29 }
  0xda   :  { %v104_v31 = vpop.f32.mrb[0].mxu0 }
  0xdb   :  { %v105_v32 = vadd.f32 %v208_v30, %v104_v31  ;;  %v238_v33 = vpop.f32.mrb[1].mxu0 }
  0xdd   :  { %v108_v34 = vmax.f32 %v105_v32, 0.0 }
  0xdf   :  { %272 = vmatmul.mubr.f32.vlgmr.msra.gmra.mrb[0].mxu1 %v108_v34 }
 0x1b2   :  { %v198_v36 = vpop.f32.mrb[0].mxu1 }
 0x1b3   :  { %v199_v37 = vadd.f32 %v211_v35, %v198_v36  ;;  %v273_v38 = vpop.f32.mrb[1].mxu1 }
 0x1b5   :  { %203 = vst.msk [vmem:[%s411_s5] sm:$0xff] %vm202_vm5, %v199_v37 }

</bundles_post_ra>
